<compile_context>
chip_gen: v7x
topology: tpu7x:2x2x1
jax: 0.10.0
libtpu: 0.0.40
codegen_flags: <defaults>
</compile_context>

<pallas_src>
import jax
import jax.numpy as jnp
import numpy as np
from jax.experimental import pallas as pl
from jax.experimental.pallas import tpu as pltpu


LANE = 128
MIN_TM = 32          # smallest row tile (multiple of 8 sublanes)
TM_CAP = 1024        # largest row tile we will consider


def _round_up(x, m):
    return (x + m - 1) // m * m


def _cdiv(a, b):
    return -(-a // b)


# ---------------------------------------------------------------------------
# Pallas kernel: fused backbone-conv (as matmul) + ReLU + 1x1 proj-conv (matmul)
# ---------------------------------------------------------------------------
def hybrid_embed_kernel(p_ref, wb_ref, bb_ref, wp_ref, bp_ref, o_ref):
    # p_ref : (TM, K)   bf16 patch rows (K = in_chans * kh * kw, small -> lane-sparse)
    # wb_ref: (K, Fp)   bf16 backbone conv weight (reshaped, zero-padded to 128)
    # bb_ref: (1, Fp)   f32  backbone conv bias (zero-padded)
    # wp_ref: (Fp, Ep)  bf16 projection (1x1 conv) weight (zero-padded)
    # bp_ref: (1, Ep)   f32  projection bias (zero-padded)
    # o_ref : (TM, Ep)  bf16 output embedding rows (lane-dense)
    h = jnp.dot(p_ref[...], wb_ref[...], preferred_element_type=jnp.float32)
    h = jnp.maximum(h + bb_ref[...], 0.0)                       # backbone ReLU
    o = jnp.dot(h.astype(wp_ref.dtype), wp_ref[...],
                preferred_element_type=jnp.float32)
    o_ref[...] = (o + bp_ref[...]).astype(o_ref.dtype)          # fp32 bias add, bf16 store


# ---------------------------------------------------------------------------
# Generation-aware VMEM budget + tile selection
# ---------------------------------------------------------------------------
def _vmem_budget_bytes():
    """Per-core VMEM budget and explicit scoped limit (bytes)."""
    try:
        cap = int(pltpu.get_tpu_info().vmem_capacity_bytes)
    except Exception:
        cap = 64 * 1024 * 1024          # conservative default (v7x per-TC size)
    # v5e/v6e (128 MiB): budget 56 MiB.  v7x (64 MiB/TC): budget 48 MiB.
    budget = max(min(cap - (16 << 20), 56 << 20), 8 << 20)
    limit = min(cap, budget + (8 << 20))   # headroom for compiler internal scratch
    return budget, limit


def _choose_tm(rows, K, F_pad, E_pad, budget_bytes, *,
               cap=TM_CAP, min_steps=4, min_tm=MIN_TM):
    """Largest row tile whose per-step working set fits the budget, then shrunk so
    the 1-D grid has >= min_steps steps (megacore sharding + DMA/compute overlap)."""
    bf16 = 2
    K_lane = _round_up(K, LANE)          # the (tm, K) tile is lane-padded in VMEM

    def vmem_need(tm):
        return (2 * tm * K_lane * bf16                   # patch tile, double-buffered
                + 2 * tm * E_pad * bf16                  # bf16 output tile, double-buffered
                + tm * F_pad * 4                         # fp32 intermediate h
                + tm * F_pad * bf16                      # bf16 copy of h for matmul2
                + 2 * (K_lane * F_pad * bf16 + F_pad * 4      # weights/biases; counted x2
                       + F_pad * E_pad * bf16 + E_pad * 4))   # in case single-buffer falls back

    tm = cap
    while tm > min_tm and vmem_need(tm) > budget_bytes:
        tm //= 2
    tm = min(tm, _round_up(rows, min_tm))
    # Guarantee several grid steps so v7x's 2 TensorCores both get work and the
    # pipeline can overlap DMA with compute even at small row counts.
    while tm > min_tm and _cdiv(rows, tm) < min_steps:
        tm //= 2
    return max(tm, min_tm)


def _build_call(tm, rows_pad, K, F_pad, E_pad, out_dtype, vmem_limit,
                flops, bytes_accessed, single_buffer_weights):
    if single_buffer_weights and hasattr(pl, "Buffered"):
        inv_kw = dict(pipeline_mode=pl.Buffered(1))      # grid-invariant -> 1 buffer
    else:
        inv_kw = {}
    return pl.pallas_call(
        hybrid_embed_kernel,
        out_shape=jax.ShapeDtypeStruct((rows_pad, E_pad), out_dtype),
        grid_spec=pltpu.PrefetchScalarGridSpec(
            num_scalar_prefetch=0,
            grid=(rows_pad // tm,),
            in_specs=[
                pl.BlockSpec((tm, K), lambda i: (i, 0)),
                pl.BlockSpec((K, F_pad), lambda i: (0, 0), **inv_kw),
                pl.BlockSpec((1, F_pad), lambda i: (0, 0), **inv_kw),
                pl.BlockSpec((F_pad, E_pad), lambda i: (0, 0), **inv_kw),
                pl.BlockSpec((1, E_pad), lambda i: (0, 0), **inv_kw),
            ],
            out_specs=pl.BlockSpec((tm, E_pad), lambda i: (i, 0)),
        ),
        compiler_params=pltpu.CompilerParams(
            dimension_semantics=("parallel",),
            vmem_limit_bytes=int(vmem_limit),
        ),
        cost_estimate=pl.CostEstimate(
            flops=flops, transcendentals=0, bytes_accessed=bytes_accessed),
    )


# ---------------------------------------------------------------------------
# HybridEmbed.forward
# ---------------------------------------------------------------------------
def hybrid_embed_forward(x_nchw, wb_oihw, bb, wp_oihw, bp, *, stride=2,
                         compute_dtype=jnp.bfloat16, out_dtype=jnp.bfloat16):
    """HybridEmbed.forward for the synthetic backbone described above.

    x_nchw : (B, C, H, W) float32  (NCHW, as in PyTorch)
    returns: (B, num_patches, embed_dim) in `out_dtype` (bf16 by default: the
             downstream ViT compute dtype; halves the output HBM stream).
    """
    B, C, H, W = x_nchw.shape
    F_dim, _, kh, kw = wb_oihw.shape
    E = wp_oihw.shape[0]
    Hg, Wg = H // stride, W // stride
    N = Hg * Wg
    rows = B * N
    K = C * kh * kw

    # Lane-dense padding of the hidden / embedding dims (the MXU pads these anyway).
    # Note: on v6e/v7x the MXU contraction depth is 256; if the real backbone's
    # channel count is near a 256 boundary prefer a 256-multiple for F_pad.
    F_pad = _round_up(F_dim, LANE)
    E_pad = _round_up(E, LANE)

    in_bytes = jnp.dtype(compute_dtype).itemsize
    out_bytes = jnp.dtype(out_dtype).itemsize

    budget, vmem_limit = _vmem_budget_bytes()
    tm = _choose_tm(rows, K, F_pad, E_pad, budget)
    rows_pad = _round_up(rows, tm)

    # --- glue: im2col for the stride==kernel backbone conv (non-overlapping patches).
    # Per-patch feature order is (c, kh, kw), matching wb_oihw.reshape(F, C*kh*kw).
    # Cast first so the materialized im2col pass is half-width; the resulting
    # (rows_pad, K) array is contiguous, so every (tm, K) tile fetch is one DMA.
    xr = x_nchw.astype(compute_dtype).reshape(B, C, Hg, kh, Wg, kw)
    patches = xr.transpose(0, 2, 4, 1, 3, 5).reshape(rows, K)
    if rows_pad != rows:
        patches = jnp.pad(patches, ((0, rows_pad - rows), (0, 0)))

    wb = wb_oihw.reshape(F_dim, K).T.astype(compute_dtype)        # (K, F)
    wb = jnp.pad(wb, ((0, 0), (0, F_pad - F_dim)))
    wp = wp_oihw.reshape(E, F_dim).T.astype(compute_dtype)        # (F, E)
    wp = jnp.pad(wp, ((0, F_pad - F_dim), (0, E_pad - E)))
    bb2 = jnp.pad(bb.astype(jnp.float32), (0, F_pad - F_dim)).reshape(1, F_pad)
    bp2 = jnp.pad(bp.astype(jnp.float32), (0, E_pad - E)).reshape(1, E_pad)

    flops = 2 * rows_pad * (K * F_pad + F_pad * E_pad)
    bytes_accessed = (rows_pad * K * in_bytes
                      + K * F_pad * in_bytes + F_pad * 4
                      + F_pad * E_pad * in_bytes + E_pad * 4
                      + rows_pad * E_pad * out_bytes)

    args = (patches, wb, bb2, wp, bp2)
    try:
        out_flat = _build_call(tm, rows_pad, K, F_pad, E_pad, out_dtype, vmem_limit,
                               flops, bytes_accessed,
                               single_buffer_weights=True)(*args)
    except Exception:
        # Fallback for JAX versions that reject pl.Buffered(1) on a pallas_call
        # operand; only VMEM usage grows (already accounted for in the budget).
        out_flat = _build_call(tm, rows_pad, K, F_pad, E_pad, out_dtype, vmem_limit,
                               flops, bytes_accessed,
                               single_buffer_weights=False)(*args)

    # --- glue: strip padding; equivalent of x.flatten(2).transpose(1, 2) in PyTorch
    return out_flat[:rows, :E].reshape(B, N, E)


# ---------------------------------------------------------------------------
# Plain-JAX reference (lax.conv) for a correctness check
# ---------------------------------------------------------------------------
def reference_forward(x_nchw, wb_oihw, bb, wp_oihw, bp, *, stride=2):
    f = jax.lax.conv_general_dilated(
        x_nchw, wb_oihw, window_strides=(stride, stride), padding="VALID",
        dimension_numbers=("NCHW", "OIHW", "NCHW"))
    f = jnp.maximum(f + bb.reshape(1, -1, 1, 1), 0.0)
    p = jax.lax.conv_general_dilated(
        f, wp_oihw, window_strides=(1, 1), padding="VALID",
        dimension_numbers=("NCHW", "OIHW", "NCHW"))
    p = p + bp.reshape(1, -1, 1, 1)
    B, E = p.shape[0], p.shape[1]
    return p.reshape(B, E, -1).transpose(0, 2, 1)   # flatten(2).transpose(1,2)


if __name__ == "__main__":
    # Small shapes consistent with HybridEmbed:
    #   img_size=16, in_chans=4, backbone stride=2 -> feature map 8x8, feature_dim=16
    #   patch_size=1, embed_dim=32 -> num_patches = 64, rows = B*64 = 128
    B, C, H, W = 2, 4, 16, 16
    F_dim, E = 16, 32
    kh = kw = stride = 2

    key = jax.random.PRNGKey(0)
    kx, kwb, kbb, kwp, kbp = jax.random.split(key, 5)

    x = jax.random.normal(kx, (B, C, H, W), dtype=jnp.float32)
    wb_oihw = 0.05 * jax.random.normal(kwb, (F_dim, C, kh, kw), dtype=jnp.float32)
    bb = 0.05 * jax.random.normal(kbb, (F_dim,), dtype=jnp.float32)
    wp_oihw = 0.05 * jax.random.normal(kwp, (E, F_dim, 1, 1), dtype=jnp.float32)
    bp = 0.05 * jax.random.normal(kbp, (E,), dtype=jnp.float32)

    out = hybrid_embed_forward(x, wb_oihw, bb, wp_oihw, bp, stride=stride)
    out = jax.block_until_ready(out)

    ref = reference_forward(x, wb_oihw, bb, wp_oihw, bp, stride=stride)
    assert out.shape == (B, (H // stride) * (W // stride), E)
    # bf16 MXU inputs / bf16 output with fp32 accumulation -> loose-ish tolerance.
    np.testing.assert_allclose(np.asarray(out, dtype=np.float32), np.asarray(ref),
                               atol=2e-2, rtol=2e-2)

    print("KERNEL_OK")
</pallas_src>

<mosaic_0001>
module attributes {stable_mosaic.version = 11 : i64} {
  func.func @hybrid_embed_kernel(%arg0: i32, %arg1: memref<32x16xbf16, #tpu.memory_space<vmem>>, %arg2: memref<16x128xbf16, #tpu.memory_space<vmem>>, %arg3: memref<1x128xf32, #tpu.memory_space<vmem>>, %arg4: memref<128x128xbf16, #tpu.memory_space<vmem>>, %arg5: memref<1x128xf32, #tpu.memory_space<vmem>>, %arg6: memref<32x128xbf16, #tpu.memory_space<vmem>>) attributes {dimension_semantics = [#tpu.dimension_semantics<parallel>], iteration_bounds = array<i64: 4>, scalar_prefetch = 0 : i64, scratch_operands = 0 : i64, tpu.core_type = #tpu.core_type<tc>, window_params = [{transform_indices = @transform_0, window_bounds = array<i64: 32, 16>}, {pipeline_mode = #tpu.pipeline_mode<synchronous>, transform_indices = @transform_1, window_bounds = array<i64: 16, 128>}, {pipeline_mode = #tpu.pipeline_mode<synchronous>, transform_indices = @transform_2, window_bounds = array<i64: 1, 128>}, {pipeline_mode = #tpu.pipeline_mode<synchronous>, transform_indices = @transform_3, window_bounds = array<i64: 128, 128>}, {pipeline_mode = #tpu.pipeline_mode<synchronous>, transform_indices = @transform_4, window_bounds = array<i64: 1, 128>}, {transform_indices = @transform_5, window_bounds = array<i64: 32, 128>}]} {
    %c0 = arith.constant 0 : index
    %c0_0 = arith.constant 0 : index
    %0 = vector.load %arg1[%c0, %c0_0] : memref<32x16xbf16, #tpu.memory_space<vmem>>, vector<32x16xbf16>
    %c0_1 = arith.constant 0 : index
    %c0_2 = arith.constant 0 : index
    %1 = vector.load %arg2[%c0_1, %c0_2] : memref<16x128xbf16, #tpu.memory_space<vmem>>, vector<16x128xbf16>
    %cst = arith.constant dense<0.000000e+00> : vector<32x128xf32>
    %2 = tpu.matmul %0, %1, %cst {dimension_numbers = #tpu.dot_dimension_numbers<[1], [0], [0], [1], [0, 0, 1, 1], [], []>} : vector<32x16xbf16>, vector<16x128xbf16>, vector<32x128xf32> -> vector<32x128xf32>
    %c0_3 = arith.constant 0 : index
    %c0_4 = arith.constant 0 : index
    %3 = vector.load %arg3[%c0_3, %c0_4] : memref<1x128xf32, #tpu.memory_space<vmem>>, vector<1x128xf32>
    %4 = vector.broadcast %3 : vector<1x128xf32> to vector<32x128xf32>
    %5 = arith.addf %2, %4 : vector<32x128xf32>
    %cst_5 = arith.constant 0.000000e+00 : f32
    %6 = vector.broadcast %cst_5 : f32 to vector<32x128xf32>
    %7 = arith.maximumf %5, %6 : vector<32x128xf32>
    %8 = arith.truncf %7 : vector<32x128xf32> to vector<32x128xbf16>
    %c0_6 = arith.constant 0 : index
    %c0_7 = arith.constant 0 : index
    %9 = vector.load %arg4[%c0_6, %c0_7] : memref<128x128xbf16, #tpu.memory_space<vmem>>, vector<128x128xbf16>
    %cst_8 = arith.constant dense<0.000000e+00> : vector<32x128xf32>
    %10 = tpu.matmul %8, %9, %cst_8 {dimension_numbers = #tpu.dot_dimension_numbers<[1], [0], [0], [1], [0, 0, 1, 1], [], []>} : vector<32x128xbf16>, vector<128x128xbf16>, vector<32x128xf32> -> vector<32x128xf32>
    %c0_9 = arith.constant 0 : index
    %c0_10 = arith.constant 0 : index
    %11 = vector.load %arg5[%c0_9, %c0_10] : memref<1x128xf32, #tpu.memory_space<vmem>>, vector<1x128xf32>
    %12 = vector.broadcast %11 : vector<1x128xf32> to vector<32x128xf32>
    %13 = arith.addf %10, %12 : vector<32x128xf32>
    %14 = arith.truncf %13 : vector<32x128xf32> to vector<32x128xbf16>
    %c0_11 = arith.constant 0 : index
    %c0_12 = arith.constant 0 : index
    %15 = vector.load %arg6[%c0_11, %c0_12] : memref<32x128xbf16, #tpu.memory_space<vmem>>, vector<32x128xbf16>
    tpu.vector_store %arg6[%c0_11, %c0_12], %14 {strides = array<i32>} : memref<32x128xbf16, #tpu.memory_space<vmem>>, vector<32x128xbf16>,
    return
  }
  func.func @transform_0(%arg0: i32) -> (i32, i32) {
    %c0_i32 = arith.constant 0 : i32
    %c0_i32_0 = arith.constant 0 : i32
    return %arg0, %c0_i32 : i32, i32
  }
  func.func @transform_1(%arg0: i32) -> (i32, i32) {
    %c0_i32 = arith.constant 0 : i32
    %c0_i32_0 = arith.constant 0 : i32
    %c0_i32_1 = arith.constant 0 : i32
    return %c0_i32, %c0_i32_0 : i32, i32
  }
  func.func @transform_2(%arg0: i32) -> (i32, i32) {
    %c0_i32 = arith.constant 0 : i32
    %c0_i32_0 = arith.constant 0 : i32
    %c0_i32_1 = arith.constant 0 : i32
    return %c0_i32, %c0_i32_0 : i32, i32
  }
  func.func @transform_3(%arg0: i32) -> (i32, i32) {
    %c0_i32 = arith.constant 0 : i32
    %c0_i32_0 = arith.constant 0 : i32
    %c0_i32_1 = arith.constant 0 : i32
    return %c0_i32, %c0_i32_0 : i32, i32
  }
  func.func @transform_4(%arg0: i32) -> (i32, i32) {
    %c0_i32 = arith.constant 0 : i32
    %c0_i32_0 = arith.constant 0 : i32
    %c0_i32_1 = arith.constant 0 : i32
    return %c0_i32, %c0_i32_0 : i32, i32
  }
  func.func @transform_5(%arg0: i32) -> (i32, i32) {
    %c0_i32 = arith.constant 0 : i32
    %c0_i32_0 = arith.constant 0 : i32
    return %arg0, %c0_i32 : i32, i32
  }
}

module attributes {stable_mosaic.version = 11 : i64} {
  func.func @hybrid_embed_kernel(%arg0: i32, %arg1: memref<32x16xbf16, #tpu.memory_space<vmem>>, %arg2: memref<16x128xbf16, #tpu.memory_space<vmem>>, %arg3: memref<1x128xf32, #tpu.memory_space<vmem>>, %arg4: memref<128x128xbf16, #tpu.memory_space<vmem>>, %arg5: memref<1x128xf32, #tpu.memory_space<vmem>>, %arg6: memref<32x128xbf16, #tpu.memory_space<vmem>>) attributes {dimension_semantics = [#tpu.dimension_semantics<parallel>], iteration_bounds = array<i64: 4>, scalar_prefetch = 0 : i64, scratch_operands = 0 : i64, tpu.core_type = #tpu.core_type<tc>, window_params = [{transform_indices = @transform_0, window_bounds = array<i64: 32, 16>}, {pipeline_mode = #tpu.pipeline_mode<synchronous>, transform_indices = @transform_1, window_bounds = array<i64: 16, 128>}, {pipeline_mode = #tpu.pipeline_mode<synchronous>, transform_indices = @transform_2, window_bounds = array<i64: 1, 128>}, {pipeline_mode = #tpu.pipeline_mode<synchronous>, transform_indices = @transform_3, window_bounds = array<i64: 128, 128>}, {pipeline_mode = #tpu.pipeline_mode<synchronous>, transform_indices = @transform_4, window_bounds = array<i64: 1, 128>}, {transform_indices = @transform_5, window_bounds = array<i64: 32, 128>}]} {
    %c0 = arith.constant 0 : index
    %c0_0 = arith.constant 0 : index
    %0 = vector.load %arg1[%c0, %c0_0] : memref<32x16xbf16, #tpu.memory_space<vmem>>, vector<32x16xbf16>
    %c0_1 = arith.constant 0 : index
    %c0_2 = arith.constant 0 : index
    %1 = vector.load %arg2[%c0_1, %c0_2] : memref<16x128xbf16, #tpu.memory_space<vmem>>, vector<16x128xbf16>
    %cst = arith.constant dense<0.000000e+00> : vector<32x128xf32>
    %2 = tpu.matmul %0, %1, %cst {dimension_numbers = #tpu.dot_dimension_numbers<[1], [0], [0], [1], [0, 0, 1, 1], [], []>} : vector<32x16xbf16>, vector<16x128xbf16>, vector<32x128xf32> -> vector<32x128xf32>
    %c0_3 = arith.constant 0 : index
    %c0_4 = arith.constant 0 : index
    %3 = vector.load %arg3[%c0_3, %c0_4] : memref<1x128xf32, #tpu.memory_space<vmem>>, vector<1x128xf32>
    %4 = vector.broadcast %3 : vector<1x128xf32> to vector<32x128xf32>
    %5 = arith.addf %2, %4 : vector<32x128xf32>
    %cst_5 = arith.constant 0.000000e+00 : f32
    %6 = vector.broadcast %cst_5 : f32 to vector<32x128xf32>
    %7 = arith.maximumf %5, %6 : vector<32x128xf32>
    %8 = arith.truncf %7 : vector<32x128xf32> to vector<32x128xbf16>
    %c0_6 = arith.constant 0 : index
    %c0_7 = arith.constant 0 : index
    %9 = vector.load %arg4[%c0_6, %c0_7] : memref<128x128xbf16, #tpu.memory_space<vmem>>, vector<128x128xbf16>
    %cst_8 = arith.constant dense<0.000000e+00> : vector<32x128xf32>
    %10 = tpu.matmul %8, %9, %cst_8 {dimension_numbers = #tpu.dot_dimension_numbers<[1], [0], [0], [1], [0, 0, 1, 1], [], []>} : vector<32x128xbf16>, vector<128x128xbf16>, vector<32x128xf32> -> vector<32x128xf32>
    %c0_9 = arith.constant 0 : index
    %c0_10 = arith.constant 0 : index
    %11 = vector.load %arg5[%c0_9, %c0_10] : memref<1x128xf32, #tpu.memory_space<vmem>>, vector<1x128xf32>
    %12 = vector.broadcast %11 : vector<1x128xf32> to vector<32x128xf32>
    %13 = arith.addf %10, %12 : vector<32x128xf32>
    %14 = arith.truncf %13 : vector<32x128xf32> to vector<32x128xbf16>
    %c0_11 = arith.constant 0 : index
    %c0_12 = arith.constant 0 : index
    %15 = vector.load %arg6[%c0_11, %c0_12] : memref<32x128xbf16, #tpu.memory_space<vmem>>, vector<32x128xbf16>
    tpu.vector_store %arg6[%c0_11, %c0_12], %14 {strides = array<i32>} : memref<32x128xbf16, #tpu.memory_space<vmem>>, vector<32x128xbf16>,
    return
  }
  func.func @transform_0(%arg0: i32) -> (i32, i32) {
    %c0_i32 = arith.constant 0 : i32
    %c0_i32_0 = arith.constant 0 : i32
    return %arg0, %c0_i32 : i32, i32
  }
  func.func @transform_1(%arg0: i32) -> (i32, i32) {
    %c0_i32 = arith.constant 0 : i32
    %c0_i32_0 = arith.constant 0 : i32
    %c0_i32_1 = arith.constant 0 : i32
    return %c0_i32, %c0_i32_0 : i32, i32
  }
  func.func @transform_2(%arg0: i32) -> (i32, i32) {
    %c0_i32 = arith.constant 0 : i32
    %c0_i32_0 = arith.constant 0 : i32
    %c0_i32_1 = arith.constant 0 : i32
    return %c0_i32, %c0_i32_0 : i32, i32
  }
  func.func @transform_3(%arg0: i32) -> (i32, i32) {
    %c0_i32 = arith.constant 0 : i32
    %c0_i32_0 = arith.constant 0 : i32
    %c0_i32_1 = arith.constant 0 : i32
    return %c0_i32, %c0_i32_0 : i32, i32
  }
  func.func @transform_4(%arg0: i32) -> (i32, i32) {
    %c0_i32 = arith.constant 0 : i32
    %c0_i32_0 = arith.constant 0 : i32
    %c0_i32_1 = arith.constant 0 : i32
    return %c0_i32, %c0_i32_0 : i32, i32
  }
  func.func @transform_5(%arg0: i32) -> (i32, i32) {
    %c0_i32 = arith.constant 0 : i32
    %c0_i32_0 = arith.constant 0 : i32
    return %arg0, %c0_i32 : i32, i32
  }
}

</mosaic_0001>

<bundles_post_ra>
// kernel: tpu_custom_call.1
= control target key start
LH: loop header
LB: loop body
LE: loop exit
PB: predicated region body
PF: predicated region fallthrough
CT: control target
= control target key end

     0   :  { %10 = vsyncpa [#allocation3], 0  ;;  %s904_s0 = inlined_call_operand.vmem [shape: bf16[128,16], index: 0, kind: input, shape index: {}]   ;;  %s905_s1 = inlined_call_operand.vmem [shape: bf16[16,128], index: 1, kind: input, shape index: {}]   ;;  %s906_s2 = inlined_call_operand.vmem [shape: f32[1,128], index: 2, kind: input, shape index: {}]   ;;  %s907_s3 = inlined_call_operand.vmem [shape: bf16[128,128], index: 3, kind: input, shape index: {}]   ;;  %s908_s4 = inlined_call_operand.vmem [shape: f32[1,128], index: 4, kind: input, shape index: {}]   ;;  %s909_s5 = inlined_call_operand.hbm [shape: bf16[128,128], index: 5, kind: output, shape index: {}]  }
   0x1   :  { %12 = vsyncpa [#allocation3 + $0x1], 0  ;;  %s769_s18 = smov 0   ;;  %s771_s19 = smov 0  }
   0x2   :  { %s773_s20 = smov 0   ;;  %s775_s21 = smov 0  }
   0x3 LB: > { %s790_s22 = sadd.s32 4294967295, %s734_s21   ;;  %s534_s23 = sadd.s32 4294967294, %s734_s21   ;;  %s734_s21 = sphi %s775_s21, %s915_s21   ;;  %s730_s20 = sphi %s773_s20, %s914_s20   ;;  %s726_s19 = sphi %s771_s19, %s913_s19   ;;  %s722_s18 = sphi %s769_s18, %s912_s18  }
   0x4   : > { %s794_s24 = sadd.s32 1, %s734_s21   ;;  %s135_s25 = sadd.s32 1, %s730_s20 }
   0x5   : > { %s132_s26 = ssub.s32 %s734_s21, %s794_s24  ;;  %p145_p0 = scmp.ne.s32.totalorder %s730_s20, %s726_s19 }
   0x6   : > { %p133_p1 = scmp.eq.s32.totalorder %s132_s26, 0  ;;  %p146_p2 = scmp.eq.s32.totalorder %s790_s22, 3 }
   0x7   : > { %p151_p3 = scmp.ne.s32.totalorder %s726_s19, %s722_s18  ;;  %p152_p4 = scmp.eq.s32.totalorder %s534_s23, 3 }
   0x8   : > { %s805_s27 = scalar_select %p133_p1, %s730_s20, %s135_s25  }
   0x9   : > { %p807_p5 = por %p146_p2, %p145_p0  ;;  %p811_p6 = por %p152_p4, %p151_p3 }
   0xa   : > { %p537_p7 = scmp.ge.s32.totalorder %s734_s21, 1  ;;  %p191_p8 = scmp.lt.s32.totalorder %s734_s21, 5 }
   0xc   : > { %p192_p9 = pnand %p537_p7, %p191_p8 }
   0xd   : > { %v661_v0 = vld [vmem:[%s905_s1] sm:$0xff] (!%p192_p9)   ;;  %s539_s7 = sshll.u32 (!%p192_p9), %s790_s22, 2  ;;  %v665_v2 = vld [vmem:[%s907_s3 + $0x8] sm:$0xff] (!%p192_p9)   ;;  %vm256_vm0 = vcmask (!%p192_p9), 130048   ;;  %v666_v3 = vld [vmem:[%s907_s3 + $0x10] sm:$0xff] (!%p192_p9)   ;;  %s216_s14 = sand.u32 (!%p192_p9), 1, %s726_s19  }
   0xe   : > { %195 = sbr.rel (%p192_p9) target bundleno = 482 (0x1e2), region = 40  ;;  %p220_p10 = scmp.lt.s32.totalorder (!%p192_p9), %s539_s7, 15  ;;  %594 = vmatprep.subr.bf16.mxu0 (!%p192_p9), %v661_v0  ;;  %v664_v1 = vld [vmem:[%s907_s3] sm:$0xff] (!%p192_p9)   ;;  %v667_v6 = vld [vmem:[%s907_s3 + $0x18] sm:$0xff] (!%p192_p9)   ;;  %v669_v8 = vld [vmem:[%s907_s3 + $0x28] sm:$0xff] (!%p192_p9)  }
   0xf   : > { %595 = vmatpush3.bf16.msra.mxu0 (!%p192_p9), %v661_v0  ;;  %600 = vmatprep.subr.bf16.mxu1 (!%p192_p9), %v664_v1  ;;  %v668_v7 = vld [vmem:[%s907_s3 + $0x20] sm:$0xff] (!%p192_p9)   ;;  %v670_v9 = vld [vmem:[%s907_s3 + $0x30] sm:$0xff] (!%p192_p9)   ;;  %v671_v10 = vld [vmem:[%s907_s3 + $0x38] sm:$0xff] (!%p192_p9)   ;;  %s569_s26 = sshll.u32 (!%p192_p9), %s790_s22, 8  ;;  %s863_s22 = scalar_lea.sflag (!%p192_p9), [#allocation3], %s216_s14 }
  0x10   : > { %601 = vmatpush3.bf16.msra.mxu1 (!%p192_p9), %v664_v1  ;;  %v541_v11 = vld [vmem:[%s906_s2] ss:$0 sm:$0xff] (!%p192_p9)  ;;  %s736_s9 = smov (!%p192_p9), [#allocation2]  }
  0x11   : > { %602 = vmatprep.subr.bf16.mxu1 (!%p192_p9), %v665_v2  ;;  %v547_v27 = vld [vmem:[%s908_s4] ss:$0 sm:$0xff] (!%p192_p9)  ;;  %s676_s10 = sshll.u32 (!%p192_p9), %s736_s9, 4  ;;  %s677_s10 = int_to_ptr.vmem [resolvable:$false] %s676_s10 }
  0x12   : > { %s678_s11 = scalar_lea.vmem (!%p192_p9), %s677_s10, 512 }
  0x14   : > { %603 = vmatpush3.bf16.msra.mxu1 (!%p192_p9), %v665_v2 }
  0x15   : > { %s917_s7 = smov (!%p220_p10, %s539_s7), 15  ;;  %604 = vmatprep.subr.bf16.mxu1 %v666_v3 }
  0x16   : > { %s540_s12 = sshll.u32 %s917_s7, 2  ;;  %s861_s7 = scalar_lea.hbm %s909_s5, %s569_s26 }
  0x17   : > { %s223_s15 = scalar_lea.vmem %s904_s0, %s540_s12 }
  0x18   : > { %v662_v4 = vld [vmem:[%s223_s15] sm:$0xff]   ;;  %v663_v5 = vld [vmem:[%s223_s15 + $0x8] sm:$0xff]   ;;  %605 = vmatpush3.bf16.msra.mxu1 %v666_v3  ;;  %s538_s15 = sshll.u32 %s216_s14, 4 }
  0x19   : > { %596 = vmatprep.mubr.msk.bf16.mxu0 %vm256_vm0, %v662_v4  ;;  %606 = vmatprep.subr.bf16.mxu1 %v667_v6  ;;  %s218_s23 = scalar_lea.vmem [#allocation2], %s538_s15 }
  0x1a   : > { %597 = vmatmul.mubr.msk.bf16.vlgmr.msra.gmra.mrb[0].mxu0 %vm256_vm0, %v663_v5  ;;  %s472_s25 = sshll.u32 %s218_s23, 4  ;;  %s856_s25 = int_to_ptr.vmem [resolvable:$true] %s472_s25 }
  0x1b   : > { %s672_s8 = scalar_lea.vmem %s856_s25, 256  ;;  %p679_p0 = scmp.lt.s32.totalorder %s856_s25, %s677_s10 }
  0x1c   : > { %607 = vmatpush3.bf16.msra.mxu1 %v667_v6  ;;  %p673_p11 = scmp.ne.s32.totalorder %s856_s25, %s672_s8  ;;  %p680_p1 = scmp.lt.s32.totalorder %s678_s11, %s672_s8 }
  0x1d   : > { %608 = vmatprep.subr.bf16.mxu1 %v668_v7 }
  0x1e   : > { %p674_p12 = pnand %p673_p11, %p807_p5  ;;  %p681_p2 = por %p680_p1, %p679_p0 }
  0x20   : > { %609 = vmatpush3.bf16.msra.mxu1 %v668_v7  ;;  %p675_p13 = pneg %p674_p12 }
  0x21   : > { %610 = vmatprep.subr.bf16.mxu1 %v669_v8 }
  0x22   : > { %p682_p3 = pnand %p681_p2, %p675_p13 }
  0x24   : > { %611 = vmatpush3.bf16.msra.mxu1 %v669_v8 }
  0x25   : > { %612 = vmatprep.subr.bf16.mxu1 %v670_v9 }
  0x28   : > { %613 = vmatpush3.bf16.msra.mxu1 %v670_v9 }
  0x29   : > { %614 = vmatprep.subr.bf16.mxu1 %v671_v10 }
  0x2c   : > { %615 = vmatpush3.bf16.msra.mxu1 %v671_v10 }
  0xed   : > { %v598_v12 = vpop.f32.mrb[0].mxu0 }
  0xee   : > { %v306_v13 = vadd.f32 %v598_v12, %v541_v11  ;;  %v297_v14 = vpop.f32.mrb[1].mxu0 }
  0xef   : > { %v298_v15 = vadd.f32 %v541_v11, %v297_v14  ;;  %v599_v16 = vpop.f32.mrb[2].mxu0 }
  0xf0   : > { %v309_v17 = vadd.f32 %v599_v16, %v541_v11  ;;  %v300_v18 = vpop.f32.mrb[3].mxu0  ;;  %v314_v20 = vmax.f32 %v306_v13, 0.0 }
  0xf1   : > { %v301_v19 = vadd.f32 %v541_v11, %v300_v18  ;;  %v312_v22 = vmax.f32 %v298_v15, 0.0 }
  0xf2   : > { %v315_v21 = vmax.f32 %v309_v17, 0.0 }
  0xf3   : > { %v313_v23 = vmax.f32 %v301_v19, 0.0 }
  0xf4   : > { %v317_v24 = vpack.c.bf16 %v315_v21, %v314_v20 }
  0xf5   : > { %v316_v25 = vpack.c.bf16 %v313_v23, %v312_v22 }
  0xf7   : > { %616 = vmatprep.mubr.bf16.mxu1 %v316_v25 }
  0xf8   : > { %617 = vmatmul.mubr.bf16.vlgmr.msra.gmra.mrb[0].mxu1 %v317_v24 }
 0x1cb   : > { %v618_v26 = vpop.f32.mrb[0].mxu1 }
 0x1cc   : > { %v423_v28 = vpop.f32.mrb[1].mxu1  ;;  %v432_v30 = vadd.f32 %v618_v26, %v547_v27 }
 0x1cd   : > { %v619_v29 = vpop.f32.mrb[2].mxu1  ;;  %v424_v33 = vadd.f32 %v547_v27, %v423_v28 }
 0x1ce   : > { %v435_v31 = vadd.f32 %v619_v29, %v547_v27  ;;  %v426_v32 = vpop.f32.mrb[3].mxu1 }
 0x1cf   : > { %v427_v34 = vadd.f32 %v547_v27, %v426_v32 }
 0x1d0   : > { %v578_v35 = vpack.c.bf16 %v435_v31, %v432_v30 }
 0x1d1   : > { %v573_v36 = vpack.c.bf16 %v427_v34, %v424_v33 }
 0x1d2   : > { %580 = vst [vmem:[%s218_s23 + $0x8] sm:$0xff] %v578_v35  }
 0x1d3   : > { %574 = vst [vmem:[%s218_s23] sm:$0xff] %v573_v36  }
 0x1d4   : > { %685 = shalt.err (!%p682_p3)
}
 0x1d5   : > { %s686_s12 = scalar_lea.hbm %s861_s7, 256  ;;  %s690_s15 = scalar_lea.hbm %s909_s5, 1024 }
 0x1d6   : > { %p687_p4 = scmp.ne.s32.totalorder %s861_s7, %s686_s12  ;;  %p691_p9 = scmp.lt.u32.totalorder %s861_s7, %s909_s5 }
 0x1d7   : > { %p692_p10 = scmp.lt.u32.totalorder %s690_s15, %s686_s12  ;;  %p694_p12 = scmp.lt.u32.totalorder %s686_s12, %s861_s7 }
 0x1d8   : > { %p688_p7 = pnand %p687_p4, %p807_p5 }
 0x1d9   : > { %p693_p11 = por %p692_p10, %p691_p9 }
 0x1da   : > { %p689_p8 = pneg %p688_p7 }
 0x1db   : > { %p695_p13 = por %p694_p12, %p693_p11 }
 0x1dd   : > { %p696_p0 = pnand %p695_p13, %p689_p8 }
 0x1df   : > { %699 = shalt.err (!%p696_p0)
}
 0x1e0   : > { %s737_s23 = smov 64   ;;  %s738_s26 = smov 4  }
 0x1e1   : > { %620 = dma.vmem_to_hbm [thread:$0]  (%p807_p5), %s856_s25, 256, %s861_s7, %s863_s22, %s737_s23, %s737_s23, %s738_s26  }
 0x1e2 PF: > { %p626_p1 = scmp.ge.s32.totalorder %s734_s21, 2  ;;  %s487_s30 = sand.u32 1, %s722_s18  }
 0x1e3   : > { %s488_s6 = scalar_lea.sflag [#allocation3], %s487_s30 }
 0x1e4   : > { %p623_p2 = pnand %p626_p1, %p811_p6 }
 0x1e6   : > { %717 = dma.done.wait (!%p623_p2), %s488_s6, 256  }
 0x1e7   : > { %719 = vsyncadd (!%p623_p2), %s488_s6, 4294967040  ;;  %p15_p3 = scmp.ge.s32.totalorder %s794_s24, 6   ;;  %s912_s18 = smov %s726_s19 }
 0x1e8   : > { %s913_s19 = smov %s730_s20  ;;  %s914_s20 = smov %s805_s27 }
 0x1e9   : > { %s915_s21 = smov %s794_s24  ;;  %17 = sbr.rel (!%p15_p3) target bundleno = 3 (0x3), region = 75 }
 0x1f0   :  { %493 = vsyncpa [#allocation3], 1 }
 0x1f1   :  { %495 = vsyncpa [#allocation3 + $0x1], 1 }

// kernel: tpu_custom_call.1
= control target key start
LH: loop header
LB: loop body
LE: loop exit
PB: predicated region body
PF: predicated region fallthrough
CT: control target
= control target key end

     0   :  { %10 = vsyncpa [#allocation3], 0  ;;  %s904_s0 = inlined_call_operand.vmem [shape: bf16[128,16], index: 0, kind: input, shape index: {}]   ;;  %s905_s1 = inlined_call_operand.vmem [shape: bf16[16,128], index: 1, kind: input, shape index: {}]   ;;  %s906_s2 = inlined_call_operand.vmem [shape: f32[1,128], index: 2, kind: input, shape index: {}]   ;;  %s907_s3 = inlined_call_operand.vmem [shape: bf16[128,128], index: 3, kind: input, shape index: {}]   ;;  %s908_s4 = inlined_call_operand.vmem [shape: f32[1,128], index: 4, kind: input, shape index: {}]   ;;  %s909_s5 = inlined_call_operand.hbm [shape: bf16[128,128], index: 5, kind: output, shape index: {}]  }
   0x1   :  { %12 = vsyncpa [#allocation3 + $0x1], 0  ;;  %s769_s18 = smov 0   ;;  %s771_s19 = smov 0  }
   0x2   :  { %s773_s20 = smov 0   ;;  %s775_s21 = smov 0  }
   0x3 LB: > { %s790_s22 = sadd.s32 4294967295, %s734_s21   ;;  %s534_s23 = sadd.s32 4294967294, %s734_s21   ;;  %s734_s21 = sphi %s775_s21, %s915_s21   ;;  %s730_s20 = sphi %s773_s20, %s914_s20   ;;  %s726_s19 = sphi %s771_s19, %s913_s19   ;;  %s722_s18 = sphi %s769_s18, %s912_s18  }
   0x4   : > { %s794_s24 = sadd.s32 1, %s734_s21   ;;  %s135_s25 = sadd.s32 1, %s730_s20 }
   0x5   : > { %s132_s26 = ssub.s32 %s734_s21, %s794_s24  ;;  %p145_p0 = scmp.ne.s32.totalorder %s730_s20, %s726_s19 }
   0x6   : > { %p133_p1 = scmp.eq.s32.totalorder %s132_s26, 0  ;;  %p146_p2 = scmp.eq.s32.totalorder %s790_s22, 3 }
   0x7   : > { %p151_p3 = scmp.ne.s32.totalorder %s726_s19, %s722_s18  ;;  %p152_p4 = scmp.eq.s32.totalorder %s534_s23, 3 }
   0x8   : > { %s805_s27 = scalar_select %p133_p1, %s730_s20, %s135_s25  }
   0x9   : > { %p807_p5 = por %p146_p2, %p145_p0  ;;  %p811_p6 = por %p152_p4, %p151_p3 }
   0xa   : > { %p537_p7 = scmp.ge.s32.totalorder %s734_s21, 1  ;;  %p191_p8 = scmp.lt.s32.totalorder %s734_s21, 5 }
   0xc   : > { %p192_p9 = pnand %p537_p7, %p191_p8 }
   0xd   : > { %v661_v0 = vld [vmem:[%s905_s1] sm:$0xff] (!%p192_p9)   ;;  %s539_s7 = sshll.u32 (!%p192_p9), %s790_s22, 2  ;;  %v665_v2 = vld [vmem:[%s907_s3 + $0x8] sm:$0xff] (!%p192_p9)   ;;  %vm256_vm0 = vcmask (!%p192_p9), 130048   ;;  %v666_v3 = vld [vmem:[%s907_s3 + $0x10] sm:$0xff] (!%p192_p9)   ;;  %s216_s14 = sand.u32 (!%p192_p9), 1, %s726_s19  }
   0xe   : > { %195 = sbr.rel (%p192_p9) target bundleno = 482 (0x1e2), region = 40  ;;  %p220_p10 = scmp.lt.s32.totalorder (!%p192_p9), %s539_s7, 15  ;;  %594 = vmatprep.subr.bf16.mxu0 (!%p192_p9), %v661_v0  ;;  %v664_v1 = vld [vmem:[%s907_s3] sm:$0xff] (!%p192_p9)   ;;  %v667_v6 = vld [vmem:[%s907_s3 + $0x18] sm:$0xff] (!%p192_p9)   ;;  %v669_v8 = vld [vmem:[%s907_s3 + $0x28] sm:$0xff] (!%p192_p9)  }
   0xf   : > { %595 = vmatpush3.bf16.msra.mxu0 (!%p192_p9), %v661_v0  ;;  %600 = vmatprep.subr.bf16.mxu1 (!%p192_p9), %v664_v1  ;;  %v668_v7 = vld [vmem:[%s907_s3 + $0x20] sm:$0xff] (!%p192_p9)   ;;  %v670_v9 = vld [vmem:[%s907_s3 + $0x30] sm:$0xff] (!%p192_p9)   ;;  %v671_v10 = vld [vmem:[%s907_s3 + $0x38] sm:$0xff] (!%p192_p9)   ;;  %s569_s26 = sshll.u32 (!%p192_p9), %s790_s22, 8  ;;  %s863_s22 = scalar_lea.sflag (!%p192_p9), [#allocation3], %s216_s14 }
  0x10   : > { %601 = vmatpush3.bf16.msra.mxu1 (!%p192_p9), %v664_v1  ;;  %v541_v11 = vld [vmem:[%s906_s2] ss:$0 sm:$0xff] (!%p192_p9)  ;;  %s736_s9 = smov (!%p192_p9), [#allocation2]  }
  0x11   : > { %602 = vmatprep.subr.bf16.mxu1 (!%p192_p9), %v665_v2  ;;  %v547_v27 = vld [vmem:[%s908_s4] ss:$0 sm:$0xff] (!%p192_p9)  ;;  %s676_s10 = sshll.u32 (!%p192_p9), %s736_s9, 4  ;;  %s677_s10 = int_to_ptr.vmem [resolvable:$false] %s676_s10 }
  0x12   : > { %s678_s11 = scalar_lea.vmem (!%p192_p9), %s677_s10, 512 }
  0x14   : > { %603 = vmatpush3.bf16.msra.mxu1 (!%p192_p9), %v665_v2 }
  0x15   : > { %s917_s7 = smov (!%p220_p10, %s539_s7), 15  ;;  %604 = vmatprep.subr.bf16.mxu1 %v666_v3 }
  0x16   : > { %s540_s12 = sshll.u32 %s917_s7, 2  ;;  %s861_s7 = scalar_lea.hbm %s909_s5, %s569_s26 }
  0x17   : > { %s223_s15 = scalar_lea.vmem %s904_s0, %s540_s12 }
  0x18   : > { %v662_v4 = vld [vmem:[%s223_s15] sm:$0xff]   ;;  %v663_v5 = vld [vmem:[%s223_s15 + $0x8] sm:$0xff]   ;;  %605 = vmatpush3.bf16.msra.mxu1 %v666_v3  ;;  %s538_s15 = sshll.u32 %s216_s14, 4 }
  0x19   : > { %596 = vmatprep.mubr.msk.bf16.mxu0 %vm256_vm0, %v662_v4  ;;  %606 = vmatprep.subr.bf16.mxu1 %v667_v6  ;;  %s218_s23 = scalar_lea.vmem [#allocation2], %s538_s15 }
  0x1a   : > { %597 = vmatmul.mubr.msk.bf16.vlgmr.msra.gmra.mrb[0].mxu0 %vm256_vm0, %v663_v5  ;;  %s472_s25 = sshll.u32 %s218_s23, 4  ;;  %s856_s25 = int_to_ptr.vmem [resolvable:$true] %s472_s25 }
  0x1b   : > { %s672_s8 = scalar_lea.vmem %s856_s25, 256  ;;  %p679_p0 = scmp.lt.s32.totalorder %s856_s25, %s677_s10 }
  0x1c   : > { %607 = vmatpush3.bf16.msra.mxu1 %v667_v6  ;;  %p673_p11 = scmp.ne.s32.totalorder %s856_s25, %s672_s8  ;;  %p680_p1 = scmp.lt.s32.totalorder %s678_s11, %s672_s8 }
  0x1d   : > { %608 = vmatprep.subr.bf16.mxu1 %v668_v7 }
  0x1e   : > { %p674_p12 = pnand %p673_p11, %p807_p5  ;;  %p681_p2 = por %p680_p1, %p679_p0 }
  0x20   : > { %609 = vmatpush3.bf16.msra.mxu1 %v668_v7  ;;  %p675_p13 = pneg %p674_p12 }
  0x21   : > { %610 = vmatprep.subr.bf16.mxu1 %v669_v8 }
  0x22   : > { %p682_p3 = pnand %p681_p2, %p675_p13 }
  0x24   : > { %611 = vmatpush3.bf16.msra.mxu1 %v669_v8 }
  0x25   : > { %612 = vmatprep.subr.bf16.mxu1 %v670_v9 }
  0x28   : > { %613 = vmatpush3.bf16.msra.mxu1 %v670_v9 }
  0x29   : > { %614 = vmatprep.subr.bf16.mxu1 %v671_v10 }
  0x2c   : > { %615 = vmatpush3.bf16.msra.mxu1 %v671_v10 }
  0xed   : > { %v598_v12 = vpop.f32.mrb[0].mxu0 }
  0xee   : > { %v306_v13 = vadd.f32 %v598_v12, %v541_v11  ;;  %v297_v14 = vpop.f32.mrb[1].mxu0 }
  0xef   : > { %v298_v15 = vadd.f32 %v541_v11, %v297_v14  ;;  %v599_v16 = vpop.f32.mrb[2].mxu0 }
  0xf0   : > { %v309_v17 = vadd.f32 %v599_v16, %v541_v11  ;;  %v300_v18 = vpop.f32.mrb[3].mxu0  ;;  %v314_v20 = vmax.f32 %v306_v13, 0.0 }
  0xf1   : > { %v301_v19 = vadd.f32 %v541_v11, %v300_v18  ;;  %v312_v22 = vmax.f32 %v298_v15, 0.0 }
  0xf2   : > { %v315_v21 = vmax.f32 %v309_v17, 0.0 }
  0xf3   : > { %v313_v23 = vmax.f32 %v301_v19, 0.0 }
  0xf4   : > { %v317_v24 = vpack.c.bf16 %v315_v21, %v314_v20 }
  0xf5   : > { %v316_v25 = vpack.c.bf16 %v313_v23, %v312_v22 }
  0xf7   : > { %616 = vmatprep.mubr.bf16.mxu1 %v316_v25 }
  0xf8   : > { %617 = vmatmul.mubr.bf16.vlgmr.msra.gmra.mrb[0].mxu1 %v317_v24 }
 0x1cb   : > { %v618_v26 = vpop.f32.mrb[0].mxu1 }
 0x1cc   : > { %v423_v28 = vpop.f32.mrb[1].mxu1  ;;  %v432_v30 = vadd.f32 %v618_v26, %v547_v27 }
 0x1cd   : > { %v619_v29 = vpop.f32.mrb[2].mxu1  ;;  %v424_v33 = vadd.f32 %v547_v27, %v423_v28 }
 0x1ce   : > { %v435_v31 = vadd.f32 %v619_v29, %v547_v27  ;;  %v426_v32 = vpop.f32.mrb[3].mxu1 }
 0x1cf   : > { %v427_v34 = vadd.f32 %v547_v27, %v426_v32 }
 0x1d0   : > { %v578_v35 = vpack.c.bf16 %v435_v31, %v432_v30 }
 0x1d1   : > { %v573_v36 = vpack.c.bf16 %v427_v34, %v424_v33 }
 0x1d2   : > { %580 = vst [vmem:[%s218_s23 + $0x8] sm:$0xff] %v578_v35  }
 0x1d3   : > { %574 = vst [vmem:[%s218_s23] sm:$0xff] %v573_v36  }
 0x1d4   : > { %685 = shalt.err (!%p682_p3)
}
 0x1d5   : > { %s686_s12 = scalar_lea.hbm %s861_s7, 256  ;;  %s690_s15 = scalar_lea.hbm %s909_s5, 1024 }
 0x1d6   : > { %p687_p4 = scmp.ne.s32.totalorder %s861_s7, %s686_s12  ;;  %p691_p9 = scmp.lt.u32.totalorder %s861_s7, %s909_s5 }
 0x1d7   : > { %p692_p10 = scmp.lt.u32.totalorder %s690_s15, %s686_s12  ;;  %p694_p12 = scmp.lt.u32.totalorder %s686_s12, %s861_s7 }
 0x1d8   : > { %p688_p7 = pnand %p687_p4, %p807_p5 }
 0x1d9   : > { %p693_p11 = por %p692_p10, %p691_p9 }
 0x1da   : > { %p689_p8 = pneg %p688_p7 }
 0x1db   : > { %p695_p13 = por %p694_p12, %p693_p11 }
 0x1dd   : > { %p696_p0 = pnand %p695_p13, %p689_p8 }
 0x1df   : > { %699 = shalt.err (!%p696_p0)
}
 0x1e0   : > { %s737_s23 = smov 64   ;;  %s738_s26 = smov 4  }
 0x1e1   : > { %620 = dma.vmem_to_hbm [thread:$0]  (%p807_p5), %s856_s25, 256, %s861_s7, %s863_s22, %s737_s23, %s737_s23, %s738_s26  }
 0x1e2 PF: > { %p626_p1 = scmp.ge.s32.totalorder %s734_s21, 2  ;;  %s487_s30 = sand.u32 1, %s722_s18  }
 0x1e3   : > { %s488_s6 = scalar_lea.sflag [#allocation3], %s487_s30 }
 0x1e4   : > { %p623_p2 = pnand %p626_p1, %p811_p6 }
 0x1e6   : > { %717 = dma.done.wait (!%p623_p2), %s488_s6, 256  }
 0x1e7   : > { %719 = vsyncadd (!%p623_p2), %s488_s6, 4294967040  ;;  %p15_p3 = scmp.ge.s32.totalorder %s794_s24, 6   ;;  %s912_s18 = smov %s726_s19 }
 0x1e8   : > { %s913_s19 = smov %s730_s20  ;;  %s914_s20 = smov %s805_s27 }
 0x1e9   : > { %s915_s21 = smov %s794_s24  ;;  %17 = sbr.rel (!%p15_p3) target bundleno = 3 (0x3), region = 75 }
 0x1f0   :  { %493 = vsyncpa [#allocation3], 1 }
 0x1f1   :  { %495 = vsyncpa [#allocation3 + $0x1], 1 }

</bundles_post_ra>
